<compile_context>
chip_gen: v5e
topology: v5e:2x2
jax: 0.10.0
libtpu: 0.0.40
codegen_flags: <defaults>
</compile_context>

<pallas_src>
import jax
import jax.numpy as jnp
from jax.experimental import pallas as pl
from jax.experimental.pallas import tpu as pltpu

# TODO(synk): the Adam optimizer, checkpoint save/load and device placement from the
# PyTorch module are host-side concerns with no Pallas equivalent; only forward() is
# implemented here.


def _critic_kernel(x_ref, w1_ref, b1_ref, w2_ref, b2_ref, w3_ref, b3_ref, out_ref):
    # x: (TILE_M, F). Cast to bf16 for the MXU only if needed; accumulate in f32
    # (v5e VPU has no bf16, so bias-add / ReLU stay f32).
    x = x_ref[...]
    if x.dtype != jnp.bfloat16:
        x = x.astype(jnp.bfloat16)
    h1 = jnp.dot(x, w1_ref[...], preferred_element_type=jnp.float32) + b1_ref[...]
    h1 = jnp.maximum(h1, 0.0)
    h2 = jnp.dot(h1.astype(jnp.bfloat16), w2_ref[...],
                 preferred_element_type=jnp.float32) + b2_ref[...]
    h2 = jnp.maximum(h2, 0.0)
    # Final N=1 projection on the MXU: far fewer vex-slot pushes than a cross-lane
    # reduce, which would share slots with (and stall) the two big dots above.
    out_ref[...] = (
        jnp.dot(h2.astype(jnp.bfloat16), w3_ref[...],
                preferred_element_type=jnp.float32) + b3_ref[...]
    )


def _round_up(x, m):
    return (x + m - 1) // m * m


def _cdiv(a, b):
    return -(-a // b)


# Single-buffer the never-re-DMA'd weights/biases when the installed JAX supports
# BlockSpec(pipeline_mode=...); otherwise fall back to the default (double-buffered)
# constant spec. Either way they are DMA'd once (constant index_map).
def _make_const_spec_factory():
    try:
        pl.BlockSpec((8, 128), lambda i: (0, 0), pipeline_mode=pl.Buffered(1))

        def const_spec(shape):
            return pl.BlockSpec(shape, lambda i: (0, 0),
                                pipeline_mode=pl.Buffered(1))
    except Exception:  # older JAX without pipeline_mode on BlockSpec
        def const_spec(shape):
            return pl.BlockSpec(shape, lambda i: (0, 0))
    return const_spec


_const_spec = _make_const_spec_factory()

# Live-VMEM budget the tile size is solved against. We request 32 MiB of scoped
# VMEM explicitly (fits every generation: v5e/v6e 128 MiB physical, v7x 64 MiB)
# and budget 20 MiB of accounted live data, leaving headroom for compiler scratch,
# relayouts and double-counting.
_VMEM_LIMIT_BYTES = 32 * 1024 * 1024
_VMEM_BUDGET_BYTES = 20 * 1024 * 1024


def _choose_tiling(batch, feat, fc1, fc2, state_itemsize, tile_m):
    """Pick (tm, n_tiles) so that per-tile VMEM fits the budget, the grid has an
    even number of >=2 steps (v7x megacore), and tail padding is bounded."""
    # Per-row live bytes inside one grid step.
    per_row = (
        2 * feat * state_itemsize   # x, double-buffered by the pipeline
        + feat * 2                  # bf16 cast of x (worst case)
        + fc1 * (4 + 2)             # h1 f32 accumulator + bf16 copy
        + fc2 * (4 + 2)             # h2 f32 accumulator + bf16 copy
        + 2 * 4                     # (tm, 1) f32 output, double-buffered
    )
    # Resident weights/biases (single buffer).
    weight_bytes = (feat * fc1 * 2 + fc1 * 4
                    + fc1 * fc2 * 2 + fc2 * 4
                    + fc2 * 2 + 4)
    tm_vmem = max(16, (_VMEM_BUDGET_BYTES - weight_bytes) // max(per_row, 1))

    # Cap by the user tile and the VMEM-derived bound; multiple of 16 (bf16 sublanes).
    tm_cap = max(16, (min(tile_m, tm_vmem) // 16) * 16)

    # >= 2 grid steps and an even count so both v7x TensorCores stay busy.
    n_tiles = max(2, _cdiv(_round_up(batch, 16), tm_cap))
    if n_tiles % 2:
        n_tiles += 1

    # Size the tile from the actual batch so the last tile is not mostly padding.
    tm = _round_up(_cdiv(batch, n_tiles), 16)
    return tm, n_tiles


def critic_forward(state, params, *, tile_m=4096):
    """PPO critic MLP forward in a single batch-tiled Pallas kernel.

    state: (batch, input_dims + n_outs) float32 or bfloat16
    params: dict with w1 (in, fc1) bf16, b1 (1, fc1) f32, w2 (fc1, fc2) bf16,
            b2 (1, fc2) f32, w3 (fc2, 1) bf16, b3 (1, 1) f32
    returns: value (batch, 1) float32
    """
    batch, feat = state.shape
    fc1 = params["w1"].shape[1]
    fc2 = params["w2"].shape[1]

    tm, n_tiles = _choose_tiling(batch, feat, fc1, fc2, state.dtype.itemsize, tile_m)
    padded_batch = tm * n_tiles
    if padded_batch != batch:
        state = jnp.pad(state, ((0, padded_batch - batch), (0, 0)))

    out = pl.pallas_call(
        _critic_kernel,
        out_shape=jax.ShapeDtypeStruct((padded_batch, 1), jnp.float32),
        grid_spec=pltpu.PrefetchScalarGridSpec(
            num_scalar_prefetch=0,
            grid=(n_tiles,),
            in_specs=[
                # Batch-tiled activations: double-buffered / pipelined by Pallas.
                pl.BlockSpec((tm, feat), lambda i: (i, 0)),
                # Weights / biases: constant index_map -> DMA once, stay resident.
                _const_spec((feat, fc1)),
                _const_spec((1, fc1)),
                _const_spec((fc1, fc2)),
                _const_spec((1, fc2)),
                _const_spec((fc2, 1)),
                _const_spec((1, 1)),
            ],
            out_specs=pl.BlockSpec((tm, 1), lambda i: (i, 0)),
        ),
        compiler_params=pltpu.CompilerParams(
            dimension_semantics=("parallel",),          # megacore sharding on v7x
            vmem_limit_bytes=_VMEM_LIMIT_BYTES,
        ),
    )(state, params["w1"], params["b1"], params["w2"], params["b2"],
      params["w3"], params["b3"])

    return out[:batch]


def init_critic_params(key, in_features, fc1_dims, fc2_dims):
    """Deterministic init mimicking torch.nn.Linear U(-1/sqrt(fan_in), 1/sqrt(fan_in))."""
    def linear(k, fan_in, fan_out):
        kw, kb = jax.random.split(k)
        bound = 1.0 / jnp.sqrt(fan_in)
        w = jax.random.uniform(kw, (fan_in, fan_out), jnp.float32, -bound, bound)
        b = jax.random.uniform(kb, (1, fan_out), jnp.float32, -bound, bound)
        return w, b

    k1, k2, k3 = jax.random.split(key, 3)
    w1, b1 = linear(k1, in_features, fc1_dims)
    w2, b2 = linear(k2, fc1_dims, fc2_dims)
    w3, b3 = linear(k3, fc2_dims, 1)
    return {
        # bf16 weights for the three MXU dots (native MXU input, halves weight
        # bytes); bias-adds, ReLU and accumulation stay f32.
        # NOTE: if fc1/fc2 are tunable, padding them to multiples of 128 improves
        # lane occupancy of h1/h2 at essentially zero extra MXU cost.
        "w1": w1.astype(jnp.bfloat16),
        "b1": b1,
        "w2": w2.astype(jnp.bfloat16),
        "b2": b2,
        "w3": w3.astype(jnp.bfloat16),   # (fc2, 1) column for the MXU head
        "b3": b3,                        # (1, 1)
    }


def critic_forward_ref(state, p):
    """Plain-JAX reference replicating the kernel's exact precision path."""
    h1 = jnp.maximum(
        jnp.dot(state.astype(jnp.bfloat16), p["w1"],
                preferred_element_type=jnp.float32) + p["b1"], 0.0)
    h2 = jnp.maximum(
        jnp.dot(h1.astype(jnp.bfloat16), p["w2"],
                preferred_element_type=jnp.float32) + p["b2"], 0.0)
    return jnp.dot(h2.astype(jnp.bfloat16), p["w3"],
                   preferred_element_type=jnp.float32) + p["b3"]


if __name__ == "__main__":
    # Small demo config consistent with the module's forward semantics.
    n_outs = 8
    input_dims = 24
    fc1_dims = 64
    fc2_dims = 32
    batch = 8

    key = jax.random.PRNGKey(0)
    k_params, k_state = jax.random.split(key)

    params = init_critic_params(k_params, input_dims + n_outs, fc1_dims, fc2_dims)
    state = jax.random.normal(k_state, (batch, input_dims + n_outs), jnp.float32)

    value = critic_forward(state, params)
    value = jax.block_until_ready(value)

    ref = critic_forward_ref(state, params)
    assert value.shape == (batch, 1)
    # bf16 MXU inputs with f32 accumulation: keep the tolerance loose enough that
    # accumulation-order differences vs. XLA's dot never make this flaky.
    assert jnp.allclose(value, ref, atol=5e-3, rtol=5e-3), (
        f"max abs err {jnp.max(jnp.abs(value - ref))}")

    print("KERNEL_OK")
</pallas_src>

<mosaic_0001>
module attributes {stable_mosaic.version = 11 : i64} {
  func.func @_critic_kernel(%arg0: i32, %arg1: memref<16x32xf32, #tpu.memory_space<vmem>>, %arg2: memref<32x64xbf16, #tpu.memory_space<vmem>>, %arg3: memref<1x64xf32, #tpu.memory_space<vmem>>, %arg4: memref<64x32xbf16, #tpu.memory_space<vmem>>, %arg5: memref<1x32xf32, #tpu.memory_space<vmem>>, %arg6: memref<32x1xbf16, #tpu.memory_space<vmem>>, %arg7: memref<1x1xf32, #tpu.memory_space<vmem>>, %arg8: memref<16x1xf32, #tpu.memory_space<vmem>>) attributes {dimension_semantics = [#tpu.dimension_semantics<parallel>], iteration_bounds = array<i64: 2>, scalar_prefetch = 0 : i64, scratch_operands = 0 : i64, tpu.core_type = #tpu.core_type<tc>, window_params = [{transform_indices = @transform_0, window_bounds = array<i64: 16, 32>}, {pipeline_mode = #tpu.pipeline_mode<synchronous>, transform_indices = @transform_1, window_bounds = array<i64: 32, 64>}, {pipeline_mode = #tpu.pipeline_mode<synchronous>, transform_indices = @transform_2, window_bounds = array<i64: 1, 64>}, {pipeline_mode = #tpu.pipeline_mode<synchronous>, transform_indices = @transform_3, window_bounds = array<i64: 64, 32>}, {pipeline_mode = #tpu.pipeline_mode<synchronous>, transform_indices = @transform_4, window_bounds = array<i64: 1, 32>}, {pipeline_mode = #tpu.pipeline_mode<synchronous>, transform_indices = @transform_5, window_bounds = array<i64: 32, 1>}, {pipeline_mode = #tpu.pipeline_mode<synchronous>, transform_indices = @transform_6, window_bounds = array<i64: 1, 1>}, {transform_indices = @transform_7, window_bounds = array<i64: 16, 1>}]} {
    %c0 = arith.constant 0 : index
    %c0_0 = arith.constant 0 : index
    %0 = vector.load %arg1[%c0, %c0_0] : memref<16x32xf32, #tpu.memory_space<vmem>>, vector<16x32xf32>
    %1 = arith.truncf %0 : vector<16x32xf32> to vector<16x32xbf16>
    %c0_1 = arith.constant 0 : index
    %c0_2 = arith.constant 0 : index
    %2 = vector.load %arg2[%c0_1, %c0_2] : memref<32x64xbf16, #tpu.memory_space<vmem>>, vector<32x64xbf16>
    %cst = arith.constant dense<0.000000e+00> : vector<16x64xf32>
    %3 = tpu.matmul %1, %2, %cst {dimension_numbers = #tpu.dot_dimension_numbers<[1], [0], [0], [1], [0, 0, 1, 1], [], []>} : vector<16x32xbf16>, vector<32x64xbf16>, vector<16x64xf32> -> vector<16x64xf32>
    %c0_3 = arith.constant 0 : index
    %c0_4 = arith.constant 0 : index
    %4 = vector.load %arg3[%c0_3, %c0_4] : memref<1x64xf32, #tpu.memory_space<vmem>>, vector<1x64xf32>
    %5 = vector.broadcast %4 : vector<1x64xf32> to vector<16x64xf32>
    %6 = arith.addf %3, %5 : vector<16x64xf32>
    %cst_5 = arith.constant 0.000000e+00 : f32
    %7 = vector.broadcast %cst_5 : f32 to vector<16x64xf32>
    %8 = arith.maximumf %6, %7 : vector<16x64xf32>
    %9 = arith.truncf %8 : vector<16x64xf32> to vector<16x64xbf16>
    %c0_6 = arith.constant 0 : index
    %c0_7 = arith.constant 0 : index
    %10 = vector.load %arg4[%c0_6, %c0_7] : memref<64x32xbf16, #tpu.memory_space<vmem>>, vector<64x32xbf16>
    %cst_8 = arith.constant dense<0.000000e+00> : vector<16x32xf32>
    %11 = tpu.matmul %9, %10, %cst_8 {dimension_numbers = #tpu.dot_dimension_numbers<[1], [0], [0], [1], [0, 0, 1, 1], [], []>} : vector<16x64xbf16>, vector<64x32xbf16>, vector<16x32xf32> -> vector<16x32xf32>
    %c0_9 = arith.constant 0 : index
    %c0_10 = arith.constant 0 : index
    %12 = vector.load %arg5[%c0_9, %c0_10] : memref<1x32xf32, #tpu.memory_space<vmem>>, vector<1x32xf32>
    %13 = vector.broadcast %12 : vector<1x32xf32> to vector<16x32xf32>
    %14 = arith.addf %11, %13 : vector<16x32xf32>
    %cst_11 = arith.constant 0.000000e+00 : f32
    %15 = vector.broadcast %cst_11 : f32 to vector<16x32xf32>
    %16 = arith.maximumf %14, %15 : vector<16x32xf32>
    %17 = arith.truncf %16 : vector<16x32xf32> to vector<16x32xbf16>
    %c0_12 = arith.constant 0 : index
    %c0_13 = arith.constant 0 : index
    %18 = vector.load %arg6[%c0_12, %c0_13] : memref<32x1xbf16, #tpu.memory_space<vmem>>, vector<32x1xbf16>
    %cst_14 = arith.constant dense<0.000000e+00> : vector<16x1xf32>
    %19 = tpu.matmul %17, %18, %cst_14 {dimension_numbers = #tpu.dot_dimension_numbers<[1], [0], [0], [1], [0, 0, 1, 1], [], []>} : vector<16x32xbf16>, vector<32x1xbf16>, vector<16x1xf32> -> vector<16x1xf32>
    %c0_15 = arith.constant 0 : index
    %c0_16 = arith.constant 0 : index
    %20 = vector.load %arg7[%c0_15, %c0_16] : memref<1x1xf32, #tpu.memory_space<vmem>>, vector<1x1xf32>
    %21 = vector.broadcast %20 : vector<1x1xf32> to vector<16x1xf32>
    %22 = arith.addf %19, %21 : vector<16x1xf32>
    %c0_17 = arith.constant 0 : index
    %c0_18 = arith.constant 0 : index
    %23 = vector.load %arg8[%c0_17, %c0_18] : memref<16x1xf32, #tpu.memory_space<vmem>>, vector<16x1xf32>
    tpu.vector_store %arg8[%c0_17, %c0_18], %22 {strides = array<i32>} : memref<16x1xf32, #tpu.memory_space<vmem>>, vector<16x1xf32>,
    return
  }
  func.func @transform_0(%arg0: i32) -> (i32, i32) {
    %c0_i32 = arith.constant 0 : i32
    %c0_i32_0 = arith.constant 0 : i32
    return %arg0, %c0_i32 : i32, i32
  }
  func.func @transform_1(%arg0: i32) -> (i32, i32) {
    %c0_i32 = arith.constant 0 : i32
    %c0_i32_0 = arith.constant 0 : i32
    %c0_i32_1 = arith.constant 0 : i32
    return %c0_i32, %c0_i32_0 : i32, i32
  }
  func.func @transform_2(%arg0: i32) -> (i32, i32) {
    %c0_i32 = arith.constant 0 : i32
    %c0_i32_0 = arith.constant 0 : i32
    %c0_i32_1 = arith.constant 0 : i32
    return %c0_i32, %c0_i32_0 : i32, i32
  }
  func.func @transform_3(%arg0: i32) -> (i32, i32) {
    %c0_i32 = arith.constant 0 : i32
    %c0_i32_0 = arith.constant 0 : i32
    %c0_i32_1 = arith.constant 0 : i32
    return %c0_i32, %c0_i32_0 : i32, i32
  }
  func.func @transform_4(%arg0: i32) -> (i32, i32) {
    %c0_i32 = arith.constant 0 : i32
    %c0_i32_0 = arith.constant 0 : i32
    %c0_i32_1 = arith.constant 0 : i32
    return %c0_i32, %c0_i32_0 : i32, i32
  }
  func.func @transform_5(%arg0: i32) -> (i32, i32) {
    %c0_i32 = arith.constant 0 : i32
    %c0_i32_0 = arith.constant 0 : i32
    %c0_i32_1 = arith.constant 0 : i32
    return %c0_i32, %c0_i32_0 : i32, i32
  }
  func.func @transform_6(%arg0: i32) -> (i32, i32) {
    %c0_i32 = arith.constant 0 : i32
    %c0_i32_0 = arith.constant 0 : i32
    %c0_i32_1 = arith.constant 0 : i32
    return %c0_i32, %c0_i32_0 : i32, i32
  }
  func.func @transform_7(%arg0: i32) -> (i32, i32) {
    %c0_i32 = arith.constant 0 : i32
    %c0_i32_0 = arith.constant 0 : i32
    return %arg0, %c0_i32 : i32, i32
  }
}

</mosaic_0001>

<bundles_post_ra>
// kernel: tpu_custom_call.1
= control target key start
LH: loop header
LB: loop body
LE: loop exit
PB: predicated region body
PF: predicated region fallthrough
CT: control target
= control target key end

     0   :  { %s598_s26 = smov 0   ;;  %s654_s0 = inlined_call_operand.vmem [shape: f32[32,32], index: 0, kind: input, shape index: {}]   ;;  %s655_s1 = inlined_call_operand.vmem [shape: bf16[32,64], index: 1, kind: input, shape index: {}]   ;;  %s656_s2 = inlined_call_operand.vmem [shape: f32[1,64], index: 2, kind: input, shape index: {}]   ;;  %s657_s3 = inlined_call_operand.vmem [shape: bf16[64,32], index: 3, kind: input, shape index: {}]   ;;  %s658_s4 = inlined_call_operand.vmem [shape: f32[1,32], index: 4, kind: input, shape index: {}]   ;;  %s659_s5 = inlined_call_operand.vmem [shape: bf16[32,1], index: 5, kind: input, shape index: {}]   ;;  %s660_s6 = inlined_call_operand.<no memory space> [shape: f32[1,1], index: 6, kind: input, shape index: {}]   ;;  %s661_s7 = inlined_call_operand.vmem [shape: f32[32,1], index: 7, kind: output, shape index: {}]  }
   0x1   :  { %v12_v0 = vstv %s660_s6 }
   0x2   :  { %13 = vst [vmem:[#allocation2] sm:$0x1] %v12_v0 }
   0x3 LB: > { %s482_s27 = sadd.s32 4294967295, %s553_s26   ;;  %p486_p0 = scmp.ge.s32.totalorder %s553_s26, 1  ;;  %s553_s26 = sphi %s598_s26, %s19_s26  }
   0x4   : > { %p240_p1 = scmp.lt.s32.totalorder %s553_s26, 3 }
   0x6   : > { %p241_p2 = pnand %p486_p0, %p240_p1 }
   0x7   : > { %s487_s6 = sshll.u32 (!%p241_p2), %s482_s27, 1 }
   0x8   : > { %244 = sbr.rel (%p241_p2) target bundleno = 444 (0x1bc), region = 48  ;;  %p273_p3 = scmp.lt.s32.totalorder (!%p241_p2), %s487_s6, 3 }
   0xd   : > { %v529_v1 = vld [vmem:[%s655_s1 + $0x8] sm:$0xff]  ;;  %v528_v2 = vld [vmem:[%s655_s1] sm:$0xff]  ;;  %s663_s6 = smov (!%p273_p3, %s487_s6), 3  ;;  %vm308_vm0 = vcmask 261120   ;;  %v533_v6 = vld [vmem:[%s657_s3 + $0x18] sm:$0xff]  ;;  %vm365_vm1 = vcmask 523264  }
   0xe   : > { %318 = vmatpush.bf16.msra.mxu0 %v529_v1  ;;  %s488_s9 = sshll.u32 %s663_s6, 3  ;;  %373 = vmatpush.bf16.msra.mxu1 %v533_v6  ;;  %v532_v7 = vld [vmem:[%s657_s3 + $0x10] sm:$0xff]  ;;  %v531_v8 = vld [vmem:[%s657_s3 + $0x8] sm:$0xff]  ;;  %v530_v9 = vld [vmem:[%s657_s3] sm:$0xff]  ;;  %vm423_vm2 = vcmask 7168  }
   0xf   : > { %s276_s12 = scalar_lea.vmem %s654_s0, %s488_s9  ;;  %v544_v11 = vld [vmem:[%s656_s2] ss:$0 sm:$0xff]  ;;  %v535_v18 = vld [vmem:[%s659_s5 + $0x8] sm:$0xff]  ;;  %s282_s10 = scalar_lea.vmem %s661_s7, %s488_s9 }
  0x10   : > { %v285_v3 = vld [vmem:[%s276_s12] sm:$0xff]  ;;  %v286_v4 = vld [vmem:[%s276_s12 + $0x8] sm:$0xff]  ;;  %415 = vmatpush.bf16.msra.mxu2 %v535_v18 }
  0x11   : > { %v287_v5 = vpack.c.bf16 %v286_v4, %v285_v3  ;;  %v534_v19 = vld [vmem:[%s659_s5] sm:$0xff] }
  0x12   : > { %319 = vmatpush.bf16.msra.mxu0 %v528_v2  ;;  %374 = vmatpush.bf16.msra.mxu1 %v532_v7  ;;  %v545_v21 = vld [vmem:[%s658_s4] ss:$0 sm:$0xff] }
  0x13   : > { %v546_v28 = vld [vmem:[#allocation2] ss:$0 sm:$0xff] }
  0x14   : > { %416 = vmatpush.bf16.msra.mxu2 %v534_v19 }
  0x15   : > { %499 = vmatmul.msk.bf16.vlgmr.msra.gmra.mxu0 %vm308_vm0, %v287_v5 }
  0x16   : > { %375 = vmatpush.bf16.msra.mxu1 %v531_v8 }
  0x1a   : > { %376 = vmatpush.bf16.msra.mxu1 %v530_v9 }
  0x92   : > { %v321_v10 = vpop.f32.mrf.mxu0 }
  0x93   : > { %v322_v12 = vadd.f32 %v544_v11, %v321_v10 }
  0x95   : > { %v326_v15 = vmax.f32 %v322_v12, 0.0 }
  0x9a   : > { %v323_v13 = vpop.f32.mrf.mxu0 }
  0x9b   : > { %v324_v14 = vadd.f32 %v544_v11, %v323_v13 }
  0x9d   : > { %v327_v16 = vmax.f32 %v324_v14, 0.0 }
  0x9f   : > { %v328_v17 = vpack.c.bf16 %v327_v16, %v326_v15 }
  0xa1   : > { %516 = vmatmul.msk.bf16.vlgmr.msra.gmra.mxu1 %vm365_vm1, %v328_v17 }
 0x11e   : > { %v378_v20 = vpop.f32.mrf.mxu1 }
 0x11f   : > { %v379_v22 = vadd.f32 %v545_v21, %v378_v20 }
 0x121   : > { %v383_v25 = vmax.f32 %v379_v22, 0.0 }
 0x126   : > { %v380_v23 = vpop.f32.mrf.mxu1 }
 0x127   : > { %v381_v24 = vadd.f32 %v545_v21, %v380_v23 }
 0x129   : > { %v384_v26 = vmax.f32 %v381_v24, 0.0 }
 0x12b   : > { %v385_v27 = vpack.c.bf16 %v384_v26, %v383_v25 }
 0x12d   : > { %525 = vmatmul.msk.bf16.vlgmr.msra.gmra.mxu2 %vm308_vm0, %v385_v27 }
 0x1b0   : > { %v418_v29 = vpop.f32.mrf.mxu2 }
 0x1b1   : > { %v419_v30 = vadd.f32 %v546_v28, %v418_v29 }
 0x1b3   : > { %424 = vst.msk [vmem:[%s282_s10] sm:$0xff] %vm423_vm2, %v419_v30 }
 0x1b8   : > { %v420_v31 = vpop.f32.mrf.mxu2 }
 0x1b9   : > { %v421_v32 = vadd.f32 %v546_v28, %v420_v31 }
 0x1bb   : > { %425 = vst.msk [vmem:[%s282_s10 + $0x8] sm:$0xff] %vm423_vm2, %v421_v32 }
 0x1bc PF: > { %s19_s26 = sadd.s32 1, %s553_s26  }
 0x1bd   : > { %p16_p4 = scmp.ge.s32.totalorder %s19_s26, 4  }
 0x1bf   :  { %18 = sbr.rel (!%p16_p4) target bundleno = 3 (0x3), region = 78 }

</bundles_post_ra>
